<compile_context>
chip_gen: v7x
topology: tpu7x:2x2x1
jax: 0.10.0
libtpu: 0.0.40
codegen_flags: <defaults>
</compile_context>

<pallas_src>
import jax
import jax.numpy as jnp
import numpy as np
from jax.experimental import pallas as pl
from jax.experimental.pallas import tpu as pltpu


def _round_up(n: int, m: int) -> int:
    return (n + m - 1) // m * m


def _vmem_capacity_bytes() -> int:
    try:
        cap = int(pltpu.get_tpu_info().vmem_capacity_bytes)
        if cap > 0:
            return cap
    except Exception:
        pass
    return 64 * 1024 * 1024  # conservative (v7x per-TC VMEM)


def _choose_batch_tile(B: int, block_b: int, h1p: int, h2p: int) -> int:
    """Batch tile: multiple of 16 (bf16 packs 16 sublanes/vreg), sized to
    (a) amortize the ~0.35us per-grid-step overhead, (b) keep the f32
    intermediate activations small enough to avoid VMEM spills, (c) avoid a
    mostly-padding last tile, and (d) give >=2 grid steps for large batches
    so the "parallel" batch axis shards across v7x's 2 TensorCores."""
    b16 = _round_up(max(B, 1), 16)
    # (b) cap the tile so the largest f32 intermediate (tb x max(h1p,h2p)) is ~2 MiB.
    cap = max(16, (2 * 1024 * 1024) // (4 * max(h1p, h2p)) // 16 * 16)
    block_b = max(16, min(_round_up(block_b, 16), cap))
    if b16 <= block_b:
        if b16 < 256:          # tiny batch: single grid step, no splitting
            return b16
        n_steps = 2            # (d) large batch that fits one tile: still split
    else:
        n_steps = max(2, -(-b16 // block_b))
    # (c) balanced tile so the last step is not mostly padding.
    return _round_up(-(-b16 // n_steps), 16)


def mlp_kernel(x_ref, w1_ref, b1_ref, w2_ref, b2_ref, w3_ref, b3_ref, o_ref):
    # In-kernel bf16 cast (no-op if the wrapper already padded+cast x); this
    # avoids an extra f32->bf16 HBM round trip when d_in is lane-aligned.
    x = x_ref[...].astype(jnp.bfloat16)
    # Layer 1: relu(x @ W1 + b1)   (bf16 MXU operands, f32 accumulate)
    y = jnp.dot(x, w1_ref[...], preferred_element_type=jnp.float32)
    y = jnp.maximum(y + b1_ref[...], 0.0)
    # Layer 2: relu(y @ W2 + b2)
    y = jnp.dot(y.astype(jnp.bfloat16), w2_ref[...],
                preferred_element_type=jnp.float32)
    y = jnp.maximum(y + b2_ref[...], 0.0)
    # Layer 3: y @ W3 + b3   (no activation)
    y = jnp.dot(y.astype(jnp.bfloat16), w3_ref[...],
                preferred_element_type=jnp.float32)
    o_ref[...] = (y + b3_ref[...]).astype(o_ref.dtype)


def prepare_params(w1, b1, w2, b2, w3, b3):
    """One-time parameter prep, hoisted out of the forward pass.

    Pads every feature dim to a multiple of 128 (lane-dense) and casts the
    weights to bf16 (MXU operands).  Biases stay f32 (VPU work stays f32).
    """
    d_in, h1 = w1.shape
    h2 = w2.shape[1]
    d_out = w3.shape[1]
    dp, h1p, h2p, op = (_round_up(d, 128) for d in (d_in, h1, h2, d_out))

    def pad2(a, rows, cols, dtype):
        out = jnp.zeros((rows, cols), dtype)
        return out.at[: a.shape[0], : a.shape[1]].set(a.astype(dtype))

    padded = (
        pad2(w1, dp, h1p, jnp.bfloat16), pad2(b1, 1, h1p, jnp.float32),
        pad2(w2, h1p, h2p, jnp.bfloat16), pad2(b2, 1, h2p, jnp.float32),
        pad2(w3, h2p, op, jnp.bfloat16), pad2(b3, 1, op, jnp.float32),
    )
    dims = dict(d_in=d_in, h1=h1, h2=h2, d_out=d_out,
                dp=dp, h1p=h1p, h2p=h2p, op=op)
    return padded, dims


def mlp_forward(x, prepared, dims, *, block_b: int = 512,
                out_dtype=jnp.float32):
    """x: (B, d_in) f32; `prepared`/`dims` from prepare_params. -> (B, d_out)."""
    w1p, b1p, w2p, b2p, w3p, b3p = prepared
    B, d_in = x.shape
    assert d_in == dims["d_in"], (d_in, dims["d_in"])
    dp, h1p, h2p, op = dims["dp"], dims["h1p"], dims["h2p"], dims["op"]
    d_out = dims["d_out"]

    tb = _choose_batch_tile(B, block_b, h1p, h2p)
    bp = _round_up(B, tb)

    # Only materialize a padded x copy when required; fuse pad + bf16 cast into
    # a single op.  Otherwise pass f32 x straight through (cast in-kernel).
    if dp != d_in or bp != B:
        xk = jnp.zeros((bp, dp), jnp.bfloat16).at[:B, :d_in].set(
            x.astype(jnp.bfloat16))
    else:
        xk = x

    grid = (bp // tb,)
    resident = lambda arr: pl.BlockSpec(arr.shape, lambda i: (0, 0))

    # --- VMEM budget derived from the actual footprint (not hard-coded). ---
    out_itemsize = np.dtype(out_dtype).itemsize
    weight_bytes = sum(int(a.size) * a.dtype.itemsize for a in prepared)
    x_tile_bytes = tb * dp * xk.dtype.itemsize
    out_tile_bytes = tb * op * out_itemsize
    interm_bytes = tb * (h1p + h2p) * (4 + 2)      # f32 activations + bf16 recasts
    footprint = (2 * (x_tile_bytes + out_tile_bytes)   # double-buffered tiles
                 + 2 * weight_bytes                    # resident (double-buffered)
                 + interm_bytes)
    vmem_limit = int(min(max(int(footprint * 1.5) + (4 << 20), 32 << 20),
                         int(0.85 * _vmem_capacity_bytes())))

    flops = 2 * B * (d_in * dims["h1"] + dims["h1"] * dims["h2"]
                     + dims["h2"] * d_out)
    bytes_accessed = (int(xk.size) * xk.dtype.itemsize
                      + weight_bytes
                      + bp * op * out_itemsize)

    out_padded = pl.pallas_call(
        mlp_kernel,
        out_shape=jax.ShapeDtypeStruct((bp, op), out_dtype),
        grid_spec=pltpu.PrefetchScalarGridSpec(
            num_scalar_prefetch=0,
            grid=grid,
            in_specs=[
                pl.BlockSpec((tb, dp), lambda i: (i, 0)),   # x: batch-tiled
                resident(w1p), resident(b1p),               # weights / biases
                resident(w2p), resident(b2p),               # stay VMEM-resident
                resident(w3p), resident(b3p),
            ],
            out_specs=pl.BlockSpec((tb, op), lambda i: (i, 0)),
        ),
        compiler_params=pltpu.CompilerParams(
            dimension_semantics=("parallel",),   # megacore sharding on v7x
            vmem_limit_bytes=vmem_limit,
        ),
        cost_estimate=pl.CostEstimate(
            flops=int(flops), transcendentals=0,
            bytes_accessed=int(bytes_accessed)),
    )(xk, w1p, b1p, w2p, b2p, w3p, b3p)

    return out_padded[:B, :d_out]


def init_params(key, input_size, output_size):
    """Deterministic init mirroring nn.Linear shapes.

    PyTorch nn.Linear(i, o) has weight (o, i), bias (o,); y = x @ W.T + b.
    We store the transposed weight (i, o) so the kernel does x @ W directly.
    """
    h1 = input_size // 2
    h2 = 50
    dims = [(input_size, h1), (h1, h2), (h2, output_size)]
    params = []
    for din, dout in dims:
        kw, kb, key = jax.random.split(key, 3)
        bound = 1.0 / (din ** 0.5)  # matches torch default uniform bound
        w = jax.random.uniform(kw, (din, dout), jnp.float32, -bound, bound)
        b = jax.random.uniform(kb, (1, dout), jnp.float32, -bound, bound)
        params.extend([w, b])
    return params


def reference_mlp(x, w1, b1, w2, b2, w3, b3):
    y = jax.nn.relu(x @ w1 + b1)
    y = jax.nn.relu(y @ w2 + b2)
    return y @ w3 + b3


if __name__ == "__main__":
    key = jax.random.PRNGKey(0)
    output_size = 10

    # --- Case 1: module's natural tiny shapes (padded x path, single grid step).
    batch, input_size = 24, 64
    kx, kp, key = jax.random.split(key, 3)
    x = jax.random.normal(kx, (batch, input_size), jnp.float32)
    params = init_params(kp, input_size, output_size)
    prepared, dims = prepare_params(*params)          # one-time hoisted prep
    out = jax.block_until_ready(mlp_forward(x, prepared, dims))
    ref = reference_mlp(x, *params)
    assert out.shape == (batch, output_size)
    assert jnp.allclose(out, ref, atol=5e-2, rtol=5e-2), (
        float(jnp.max(jnp.abs(out - ref))))

    # --- Case 2: lane-aligned d_in and batch divisible by the tile ->
    # x streams through in f32 (no HBM pad/cast), multi-step batch grid.
    batch2, input_size2 = 64, 128
    kx2, kp2, key = jax.random.split(key, 3)
    x2 = jax.random.normal(kx2, (batch2, input_size2), jnp.float32)
    params2 = init_params(kp2, input_size2, output_size)
    prepared2, dims2 = prepare_params(*params2)
    out2 = jax.block_until_ready(
        mlp_forward(x2, prepared2, dims2, block_b=16))  # forces a 4-step grid
    ref2 = reference_mlp(x2, *params2)
    assert out2.shape == (batch2, output_size)
    assert jnp.allclose(out2, ref2, atol=5e-2, rtol=5e-2), (
        float(jnp.max(jnp.abs(out2 - ref2))))

    print("KERNEL_OK")
</pallas_src>

<mosaic_0001>
module attributes {stable_mosaic.version = 11 : i64} {
  func.func @mlp_kernel(%arg0: i32, %arg1: memref<32x128xbf16, #tpu.memory_space<vmem>>, %arg2: memref<128x128xbf16, #tpu.memory_space<vmem>>, %arg3: memref<1x128xf32, #tpu.memory_space<vmem>>, %arg4: memref<128x128xbf16, #tpu.memory_space<vmem>>, %arg5: memref<1x128xf32, #tpu.memory_space<vmem>>, %arg6: memref<128x128xbf16, #tpu.memory_space<vmem>>, %arg7: memref<1x128xf32, #tpu.memory_space<vmem>>, %arg8: memref<32x128xf32, #tpu.memory_space<vmem>>) attributes {dimension_semantics = [#tpu.dimension_semantics<parallel>], iteration_bounds = array<i64: 1>, scalar_prefetch = 0 : i64, scratch_operands = 0 : i64, tpu.core_type = #tpu.core_type<tc>, window_params = [{transform_indices = @transform_0, window_bounds = array<i64: 32, 128>}, {pipeline_mode = #tpu.pipeline_mode<synchronous>, transform_indices = @transform_1, window_bounds = array<i64: 128, 128>}, {pipeline_mode = #tpu.pipeline_mode<synchronous>, transform_indices = @transform_2, window_bounds = array<i64: 1, 128>}, {pipeline_mode = #tpu.pipeline_mode<synchronous>, transform_indices = @transform_3, window_bounds = array<i64: 128, 128>}, {pipeline_mode = #tpu.pipeline_mode<synchronous>, transform_indices = @transform_4, window_bounds = array<i64: 1, 128>}, {pipeline_mode = #tpu.pipeline_mode<synchronous>, transform_indices = @transform_5, window_bounds = array<i64: 128, 128>}, {pipeline_mode = #tpu.pipeline_mode<synchronous>, transform_indices = @transform_6, window_bounds = array<i64: 1, 128>}, {transform_indices = @transform_7, window_bounds = array<i64: 32, 128>}]} {
    %c0 = arith.constant 0 : index
    %c0_0 = arith.constant 0 : index
    %0 = vector.load %arg1[%c0, %c0_0] : memref<32x128xbf16, #tpu.memory_space<vmem>>, vector<32x128xbf16>
    %c0_1 = arith.constant 0 : index
    %c0_2 = arith.constant 0 : index
    %1 = vector.load %arg2[%c0_1, %c0_2] : memref<128x128xbf16, #tpu.memory_space<vmem>>, vector<128x128xbf16>
    %cst = arith.constant dense<0.000000e+00> : vector<32x128xf32>
    %2 = tpu.matmul %0, %1, %cst {dimension_numbers = #tpu.dot_dimension_numbers<[1], [0], [0], [1], [0, 0, 1, 1], [], []>} : vector<32x128xbf16>, vector<128x128xbf16>, vector<32x128xf32> -> vector<32x128xf32>
    %c0_3 = arith.constant 0 : index
    %c0_4 = arith.constant 0 : index
    %3 = vector.load %arg3[%c0_3, %c0_4] : memref<1x128xf32, #tpu.memory_space<vmem>>, vector<1x128xf32>
    %4 = vector.broadcast %3 : vector<1x128xf32> to vector<32x128xf32>
    %5 = arith.addf %2, %4 : vector<32x128xf32>
    %cst_5 = arith.constant 0.000000e+00 : f32
    %6 = vector.broadcast %cst_5 : f32 to vector<32x128xf32>
    %7 = arith.maximumf %5, %6 : vector<32x128xf32>
    %8 = arith.truncf %7 : vector<32x128xf32> to vector<32x128xbf16>
    %c0_6 = arith.constant 0 : index
    %c0_7 = arith.constant 0 : index
    %9 = vector.load %arg4[%c0_6, %c0_7] : memref<128x128xbf16, #tpu.memory_space<vmem>>, vector<128x128xbf16>
    %cst_8 = arith.constant dense<0.000000e+00> : vector<32x128xf32>
    %10 = tpu.matmul %8, %9, %cst_8 {dimension_numbers = #tpu.dot_dimension_numbers<[1], [0], [0], [1], [0, 0, 1, 1], [], []>} : vector<32x128xbf16>, vector<128x128xbf16>, vector<32x128xf32> -> vector<32x128xf32>
    %c0_9 = arith.constant 0 : index
    %c0_10 = arith.constant 0 : index
    %11 = vector.load %arg5[%c0_9, %c0_10] : memref<1x128xf32, #tpu.memory_space<vmem>>, vector<1x128xf32>
    %12 = vector.broadcast %11 : vector<1x128xf32> to vector<32x128xf32>
    %13 = arith.addf %10, %12 : vector<32x128xf32>
    %cst_11 = arith.constant 0.000000e+00 : f32
    %14 = vector.broadcast %cst_11 : f32 to vector<32x128xf32>
    %15 = arith.maximumf %13, %14 : vector<32x128xf32>
    %16 = arith.truncf %15 : vector<32x128xf32> to vector<32x128xbf16>
    %c0_12 = arith.constant 0 : index
    %c0_13 = arith.constant 0 : index
    %17 = vector.load %arg6[%c0_12, %c0_13] : memref<128x128xbf16, #tpu.memory_space<vmem>>, vector<128x128xbf16>
    %cst_14 = arith.constant dense<0.000000e+00> : vector<32x128xf32>
    %18 = tpu.matmul %16, %17, %cst_14 {dimension_numbers = #tpu.dot_dimension_numbers<[1], [0], [0], [1], [0, 0, 1, 1], [], []>} : vector<32x128xbf16>, vector<128x128xbf16>, vector<32x128xf32> -> vector<32x128xf32>
    %c0_15 = arith.constant 0 : index
    %c0_16 = arith.constant 0 : index
    %19 = vector.load %arg7[%c0_15, %c0_16] : memref<1x128xf32, #tpu.memory_space<vmem>>, vector<1x128xf32>
    %20 = vector.broadcast %19 : vector<1x128xf32> to vector<32x128xf32>
    %21 = arith.addf %18, %20 : vector<32x128xf32>
    %c0_17 = arith.constant 0 : index
    %c0_18 = arith.constant 0 : index
    %22 = vector.load %arg8[%c0_17, %c0_18] : memref<32x128xf32, #tpu.memory_space<vmem>>, vector<32x128xf32>
    tpu.vector_store %arg8[%c0_17, %c0_18], %21 {strides = array<i32>} : memref<32x128xf32, #tpu.memory_space<vmem>>, vector<32x128xf32>,
    return
  }
  func.func @transform_0(%arg0: i32) -> (i32, i32) {
    %c0_i32 = arith.constant 0 : i32
    %c0_i32_0 = arith.constant 0 : i32
    return %arg0, %c0_i32 : i32, i32
  }
  func.func @transform_1(%arg0: i32) -> (i32, i32) {
    %c0_i32 = arith.constant 0 : i32
    %c0_i32_0 = arith.constant 0 : i32
    %c0_i32_1 = arith.constant 0 : i32
    return %c0_i32, %c0_i32_0 : i32, i32
  }
  func.func @transform_2(%arg0: i32) -> (i32, i32) {
    %c0_i32 = arith.constant 0 : i32
    %c0_i32_0 = arith.constant 0 : i32
    %c0_i32_1 = arith.constant 0 : i32
    return %c0_i32, %c0_i32_0 : i32, i32
  }
  func.func @transform_3(%arg0: i32) -> (i32, i32) {
    %c0_i32 = arith.constant 0 : i32
    %c0_i32_0 = arith.constant 0 : i32
    %c0_i32_1 = arith.constant 0 : i32
    return %c0_i32, %c0_i32_0 : i32, i32
  }
  func.func @transform_4(%arg0: i32) -> (i32, i32) {
    %c0_i32 = arith.constant 0 : i32
    %c0_i32_0 = arith.constant 0 : i32
    %c0_i32_1 = arith.constant 0 : i32
    return %c0_i32, %c0_i32_0 : i32, i32
  }
  func.func @transform_5(%arg0: i32) -> (i32, i32) {
    %c0_i32 = arith.constant 0 : i32
    %c0_i32_0 = arith.constant 0 : i32
    %c0_i32_1 = arith.constant 0 : i32
    return %c0_i32, %c0_i32_0 : i32, i32
  }
  func.func @transform_6(%arg0: i32) -> (i32, i32) {
    %c0_i32 = arith.constant 0 : i32
    %c0_i32_0 = arith.constant 0 : i32
    %c0_i32_1 = arith.constant 0 : i32
    return %c0_i32, %c0_i32_0 : i32, i32
  }
  func.func @transform_7(%arg0: i32) -> (i32, i32) {
    %c0_i32 = arith.constant 0 : i32
    %c0_i32_0 = arith.constant 0 : i32
    return %arg0, %c0_i32 : i32, i32
  }
}

</mosaic_0001>

<bundles_post_ra>
// kernel: tpu_custom_call.1
= control target key start
LH: loop header
LB: loop body
LE: loop exit
PB: predicated region body
PF: predicated region fallthrough
CT: control target
= control target key end

     0   :  { %12 = vsyncpa [#allocation3], 0  ;;  %s910_s0 = inlined_call_operand.hbm [shape: bf16[32,128], index: 0, kind: input, shape index: {}]   ;;  %s911_s1 = inlined_call_operand.hbm [shape: bf16[128,128], index: 1, kind: input, shape index: {}]   ;;  %s912_s2 = inlined_call_operand.vmem [shape: f32[1,128], index: 2, kind: input, shape index: {}]   ;;  %s913_s3 = inlined_call_operand.hbm [shape: bf16[128,128], index: 3, kind: input, shape index: {}]   ;;  %s914_s4 = inlined_call_operand.vmem [shape: f32[1,128], index: 4, kind: input, shape index: {}]   ;;  %s915_s5 = inlined_call_operand.hbm [shape: bf16[128,128], index: 5, kind: input, shape index: {}]   ;;  %s916_s6 = inlined_call_operand.vmem [shape: f32[1,128], index: 6, kind: input, shape index: {}]   ;;  %s917_s7 = inlined_call_operand.hbm [shape: f32[32,128], index: 7, kind: output, shape index: {}]  }
   0x1   :  { %13 = vsyncpa [#allocation6], 0 }
   0x2   :  { %14 = vsyncpa [#allocation9], 0 }
   0x3   :  { %15 = vsyncpa [#allocation4], 0  ;;  %s766_s24 = smov [#allocation5]   ;;  %s767_s26 = smov [#allocation2]  }
   0x4   :  { %s33_s25 = sshll.u32 %s766_s24, 4  ;;  %s21_s27 = sshll.u32 %s767_s26, 4  ;;  %s34_s25 = int_to_ptr.vmem [resolvable:$true] %s33_s25  ;;  %s815_s27 = int_to_ptr.vmem [resolvable:$true] %s21_s27 }
   0x5   :  { %s648_s30 = scalar_lea.hbm %s911_s1, 1024 }
   0x6   :  { %p649_p0 = scmp.ne.s32.totalorder %s911_s1, %s648_s30  ;;  %p652_p1 = scmp.lt.u32.totalorder %s648_s30, %s911_s1 }
   0x8   :  { %p654_p2 = pnand %p652_p1, %p649_p0 }
   0xa   :  { %657 = shalt.err (!%p654_p2)
}
   0xb   :  { %s658_s12 = scalar_lea.vmem %s34_s25, 1024  ;;  %p663_p4 = scmp.lt.s32.totalorder %s34_s25, %s34_s25 }
   0xc   :  { %p659_p3 = scmp.ne.s32.totalorder %s34_s25, %s658_s12  ;;  %p664_p5 = scmp.lt.s32.totalorder %s658_s12, %s658_s12 }
   0xe   :  { %p665_p6 = por %p664_p5, %p663_p4 }
  0x10   :  { %p666_p7 = pnand %p665_p6, %p659_p3 }
  0x12   :  { %669 = shalt.err (!%p666_p7)
}
  0x13   :  { %s768_s13 = smov 64   ;;  %s769_s14 = smov 4  }
  0x14   :  { %39 = dma.hbm_to_vmem [thread:$0]  %s911_s1, 1024, %s34_s25, [#allocation6], %s768_s13, %s768_s13, %s769_s14  }
  0x15   :  { %s670_s19 = scalar_lea.hbm %s910_s0, 256 }
  0x16   :  { %p671_p8 = scmp.ne.s32.totalorder %s910_s0, %s670_s19  ;;  %p674_p9 = scmp.lt.u32.totalorder %s670_s19, %s910_s0 }
  0x18   :  { %p676_p10 = pnand %p674_p9, %p671_p8 }
  0x1a   :  { %679 = shalt.err (!%p676_p10)
}
  0x1b   :  { %s680_s24 = scalar_lea.vmem %s815_s27, 256  ;;  %p685_p12 = scmp.lt.s32.totalorder %s815_s27, %s815_s27 }
  0x1c   :  { %p681_p11 = scmp.ne.s32.totalorder %s815_s27, %s680_s24  ;;  %p686_p13 = scmp.lt.s32.totalorder %s680_s24, %s680_s24 }
  0x1e   :  { %p687_p0 = por %p686_p13, %p685_p12 }
  0x20   :  { %p688_p1 = pnand %p687_p0, %p681_p11 }
  0x22   :  { %691 = shalt.err (!%p688_p1)
}
  0x23   :  { %27 = dma.hbm_to_vmem [thread:$0]  %s910_s0, 256, %s815_s27, [#allocation3], %s768_s13, %s768_s13, %s769_s14  }
  0x24   :  { %s770_s26 = smov [#allocation7]   ;;  %s771_s29 = smov [#allocation8]  }
  0x25   :  { %s47_s28 = sshll.u32 %s770_s26, 4  ;;  %s61_s30 = sshll.u32 %s771_s29, 4  ;;  %s48_s28 = int_to_ptr.vmem [resolvable:$true] %s47_s28  ;;  %s852_s30 = int_to_ptr.vmem [resolvable:$true] %s61_s30 }
  0x26   :  { %s692_s10 = scalar_lea.hbm %s913_s3, 1024 }
  0x27   :  { %p693_p2 = scmp.ne.s32.totalorder %s913_s3, %s692_s10  ;;  %p696_p3 = scmp.lt.u32.totalorder %s692_s10, %s913_s3 }
  0x29   :  { %p698_p4 = pnand %p696_p3, %p693_p2 }
  0x2b   :  { %701 = shalt.err (!%p698_p4)
}
  0x2c   :  { %s702_s0 = scalar_lea.vmem %s48_s28, 1024  ;;  %p707_p6 = scmp.lt.s32.totalorder %s48_s28, %s48_s28 }
  0x2d   :  { %p703_p5 = scmp.ne.s32.totalorder %s48_s28, %s702_s0  ;;  %p708_p7 = scmp.lt.s32.totalorder %s702_s0, %s702_s0 }
  0x2f   :  { %p709_p8 = por %p708_p7, %p707_p6 }
  0x31   :  { %p710_p9 = pnand %p709_p8, %p703_p5 }
  0x33   :  { %713 = shalt.err (!%p710_p9)
}
  0x34   :  { %53 = dma.hbm_to_vmem [thread:$0]  %s913_s3, 1024, %s48_s28, [#allocation6], %s768_s13, %s768_s13, %s769_s14  }
  0x35   :  { %s714_s20 = scalar_lea.hbm %s915_s5, 1024 }
  0x36   :  { %p715_p10 = scmp.ne.s32.totalorder %s915_s5, %s714_s20  ;;  %p718_p11 = scmp.lt.u32.totalorder %s714_s20, %s915_s5 }
  0x38   :  { %p720_p12 = pnand %p718_p11, %p715_p10 }
  0x3a   :  { %723 = shalt.err (!%p720_p12)
}
  0x3b   :  { %s724_s1 = scalar_lea.vmem %s852_s30, 1024  ;;  %p729_p0 = scmp.lt.s32.totalorder %s852_s30, %s852_s30 }
  0x3c   :  { %p725_p13 = scmp.ne.s32.totalorder %s852_s30, %s724_s1  ;;  %p730_p1 = scmp.lt.s32.totalorder %s724_s1, %s724_s1 }
  0x3e   :  { %p731_p2 = por %p730_p1, %p729_p0 }
  0x40   :  { %p732_p3 = pnand %p731_p2, %p725_p13 }
  0x42   :  { %735 = shalt.err (!%p732_p3)
}
  0x43   :  { %67 = dma.hbm_to_vmem [thread:$0]  %s915_s5, 1024, %s852_s30, [#allocation9], %s768_s13, %s768_s13, %s769_s14  }
  0x44   :  { %758 = dma.done.wait [#allocation3], 256  }
  0x45   :  { %759 = vsyncadd [#allocation3], 4294967040 }
  0x46   :  { %760 = dma.done.wait [#allocation6], 2048  }
  0x47   :  { %761 = vsyncadd [#allocation6], 4294965248 }
  0x48   :  { %762 = dma.done.wait [#allocation9], 1024  }
  0x49   :  { %763 = vsyncadd [#allocation9], 4294966272  ;;  %v622_v0 = vld [vmem:[#allocation5] sm:$0xff]   ;;  %v623_v1 = vld [vmem:[#allocation5 + $0x8] sm:$0xff]  }
  0x4a   :  { %553 = vmatprep.subr.bf16.mxu0 %v622_v0  ;;  %v624_v2 = vld [vmem:[#allocation5 + $0x10] sm:$0xff]   ;;  %v625_v3 = vld [vmem:[#allocation5 + $0x18] sm:$0xff]   ;;  %v632_v5 = vld [vmem:[#allocation7] sm:$0xff]  }
  0x4b   :  { %554 = vmatpush3.bf16.msra.mxu0 %v622_v0  ;;  %v630_v4 = vld [vmem:[#allocation2] sm:$0xff]   ;;  %v633_v6 = vld [vmem:[#allocation7 + $0x8] sm:$0xff]   ;;  %v626_v7 = vld [vmem:[#allocation5 + $0x20] sm:$0xff]   ;;  %573 = vmatprep.subr.bf16.mxu1 %v632_v5 }
  0x4c   :  { %555 = vmatprep.subr.bf16.mxu0 %v623_v1  ;;  %569 = vmatprep.mubr.bf16.mxu0 %v630_v4  ;;  %v634_v8 = vld [vmem:[#allocation7 + $0x10] sm:$0xff]   ;;  %v627_v9 = vld [vmem:[#allocation5 + $0x28] sm:$0xff]   ;;  %v635_v10 = vld [vmem:[#allocation7 + $0x18] sm:$0xff]  }
  0x4d   :  { %574 = vmatpush3.bf16.msra.mxu1 %v632_v5  ;;  %v628_v11 = vld [vmem:[#allocation5 + $0x30] sm:$0xff]   ;;  %v636_v12 = vld [vmem:[#allocation7 + $0x20] sm:$0xff]   ;;  %v629_v13 = vld [vmem:[#allocation5 + $0x38] sm:$0xff]  }
  0x4e   :  { %575 = vmatprep.subr.bf16.mxu1 %v633_v6  ;;  %v637_v14 = vld [vmem:[#allocation7 + $0x28] sm:$0xff]   ;;  %v631_v15 = vld [vmem:[#allocation2 + $0x8] sm:$0xff]   ;;  %v638_v16 = vld [vmem:[#allocation7 + $0x30] sm:$0xff]  }
  0x4f   :  { %556 = vmatpush3.bf16.msra.mxu0 %v623_v1  ;;  %v639_v17 = vld [vmem:[#allocation7 + $0x38] sm:$0xff]   ;;  %v640_v18 = vld [vmem:[#allocation8] sm:$0xff]   ;;  %v641_v19 = vld [vmem:[#allocation8 + $0x8] sm:$0xff]  }
  0x50   :  { %557 = vmatprep.subr.bf16.mxu0 %v624_v2  ;;  %v642_v20 = vld [vmem:[#allocation8 + $0x10] sm:$0xff]   ;;  %v643_v21 = vld [vmem:[#allocation8 + $0x18] sm:$0xff]   ;;  %v644_v22 = vld [vmem:[#allocation8 + $0x20] sm:$0xff]  }
  0x51   :  { %576 = vmatpush3.bf16.msra.mxu1 %v633_v6  ;;  %v645_v23 = vld [vmem:[#allocation8 + $0x28] sm:$0xff]   ;;  %v494_v24 = vld [vmem:[%s912_s2] ss:$0 sm:$0xff]  ;;  %v647_v40 = vld [vmem:[#allocation8 + $0x38] sm:$0xff]  }
  0x52   :  { %577 = vmatprep.subr.bf16.mxu1 %v634_v8  ;;  %v646_v39 = vld [vmem:[#allocation8 + $0x30] sm:$0xff]  }
  0x53   :  { %558 = vmatpush3.bf16.msra.mxu0 %v624_v2  ;;  %v505_v41 = vld [vmem:[%s914_s4] ss:$0 sm:$0xff]  ;;  %s772_s4 = smov [#allocation10]  }
  0x54   :  { %559 = vmatprep.subr.bf16.mxu0 %v625_v3  ;;  %v514_v56 = vld [vmem:[%s916_s6] ss:$0 sm:$0xff]  ;;  %s480_s29 = sshll.u32 %s772_s4, 4  ;;  %s481_s29 = int_to_ptr.vmem [resolvable:$true] %s480_s29 }
  0x55   :  { %578 = vmatpush3.bf16.msra.mxu1 %v634_v8  ;;  %s736_s30 = scalar_lea.vmem %s481_s29, 512  ;;  %p741_p5 = scmp.lt.s32.totalorder %s481_s29, %s481_s29 }
  0x56   :  { %579 = vmatprep.subr.bf16.mxu1 %v635_v10  ;;  %p737_p4 = scmp.ne.s32.totalorder %s481_s29, %s736_s30  ;;  %p742_p6 = scmp.lt.s32.totalorder %s736_s30, %s736_s30 }
  0x57   :  { %560 = vmatpush3.bf16.msra.mxu0 %v625_v3 }
  0x58   :  { %561 = vmatprep.subr.bf16.mxu0 %v626_v7  ;;  %p743_p7 = por %p742_p6, %p741_p5 }
  0x59   :  { %580 = vmatpush3.bf16.msra.mxu1 %v635_v10 }
  0x5a   :  { %581 = vmatprep.subr.bf16.mxu1 %v636_v12  ;;  %p744_p8 = pnand %p743_p7, %p737_p4 }
  0x5b   :  { %562 = vmatpush3.bf16.msra.mxu0 %v626_v7 }
  0x5c   :  { %563 = vmatprep.subr.bf16.mxu0 %v627_v9 }
  0x5d   :  { %582 = vmatpush3.bf16.msra.mxu1 %v636_v12 }
  0x5e   :  { %583 = vmatprep.subr.bf16.mxu1 %v637_v14 }
  0x5f   :  { %564 = vmatpush3.bf16.msra.mxu0 %v627_v9 }
  0x60   :  { %565 = vmatprep.subr.bf16.mxu0 %v628_v11 }
  0x61   :  { %584 = vmatpush3.bf16.msra.mxu1 %v637_v14 }
  0x62   :  { %585 = vmatprep.subr.bf16.mxu1 %v638_v16 }
  0x63   :  { %566 = vmatpush3.bf16.msra.mxu0 %v628_v11 }
  0x64   :  { %567 = vmatprep.subr.bf16.mxu0 %v629_v13 }
  0x65   :  { %586 = vmatpush3.bf16.msra.mxu1 %v638_v16 }
  0x66   :  { %587 = vmatprep.subr.bf16.mxu1 %v639_v17 }
  0x67   :  { %568 = vmatpush3.bf16.msra.mxu0 %v629_v13 }
  0x68   :  { %593 = vmatprep.subr.bf16.mxu0 %v640_v18 }
  0x69   :  { %588 = vmatpush3.bf16.msra.mxu1 %v639_v17 }
  0x6a   :  { %570 = vmatmul.mubr.bf16.vlgmr.msra.gmra.mrb[0].mxu0 %v631_v15 }
  0x6b   :  { %594 = vmatpush3.bf16.msra.mxu0 %v640_v18 }
  0x6c   :  { %595 = vmatprep.subr.bf16.mxu0 %v641_v19 }
  0x6f   :  { %596 = vmatpush3.bf16.msra.mxu0 %v641_v19 }
  0x70   :  { %597 = vmatprep.subr.bf16.mxu0 %v642_v20 }
  0x73   :  { %598 = vmatpush3.bf16.msra.mxu0 %v642_v20 }
  0x74   :  { %599 = vmatprep.subr.bf16.mxu0 %v643_v21 }
  0x77   :  { %600 = vmatpush3.bf16.msra.mxu0 %v643_v21 }
  0x78   :  { %601 = vmatprep.subr.bf16.mxu0 %v644_v22 }
  0x7b   :  { %602 = vmatpush3.bf16.msra.mxu0 %v644_v22 }
  0x7c   :  { %603 = vmatprep.subr.bf16.mxu0 %v645_v23 }
  0x7f   :  { %604 = vmatpush3.bf16.msra.mxu0 %v645_v23 }
  0x80   :  { %605 = vmatprep.subr.bf16.mxu0 %v646_v39 }
  0x83   :  { %606 = vmatpush3.bf16.msra.mxu0 %v646_v39 }
  0x84   :  { %607 = vmatprep.subr.bf16.mxu0 %v647_v40 }
  0x87   :  { %608 = vmatpush3.bf16.msra.mxu0 %v647_v40 }
 0x13d   :  { %v571_v25 = vpop.f32.mrb[0].mxu0 }
 0x13e   :  { %v213_v26 = vadd.f32 %v571_v25, %v494_v24  ;;  %v204_v27 = vpop.f32.mrb[1].mxu0 }
 0x13f   :  { %v205_v28 = vadd.f32 %v494_v24, %v204_v27  ;;  %v572_v29 = vpop.f32.mrb[2].mxu0 }
 0x140   :  { %v216_v30 = vadd.f32 %v572_v29, %v494_v24  ;;  %v207_v31 = vpop.f32.mrb[3].mxu0  ;;  %v221_v33 = vmax.f32 %v213_v26, 0.0 }
 0x141   :  { %v208_v32 = vadd.f32 %v494_v24, %v207_v31  ;;  %v219_v35 = vmax.f32 %v205_v28, 0.0 }
 0x142   :  { %v222_v34 = vmax.f32 %v216_v30, 0.0 }
 0x143   :  { %v220_v36 = vmax.f32 %v208_v32, 0.0 }
 0x144   :  { %v224_v37 = vpack.c.bf16 %v222_v34, %v221_v33 }
 0x145   :  { %v223_v38 = vpack.c.bf16 %v220_v36, %v219_v35 }
 0x147   :  { %589 = vmatprep.mubr.bf16.mxu1 %v223_v38 }
 0x148   :  { %590 = vmatmul.mubr.bf16.vlgmr.msra.gmra.mrb[0].mxu1 %v224_v37 }
 0x21b   :  { %v591_v42 = vpop.f32.mrb[0].mxu1 }
 0x21c   :  { %v339_v43 = vadd.f32 %v591_v42, %v505_v41  ;;  %v330_v44 = vpop.f32.mrb[1].mxu1 }
 0x21d   :  { %v331_v45 = vadd.f32 %v505_v41, %v330_v44  ;;  %v592_v46 = vpop.f32.mrb[2].mxu1 }
 0x21e   :  { %v342_v47 = vadd.f32 %v592_v46, %v505_v41  ;;  %v333_v48 = vpop.f32.mrb[3].mxu1  ;;  %v347_v50 = vmax.f32 %v339_v43, 0.0 }
 0x21f   :  { %v334_v49 = vadd.f32 %v505_v41, %v333_v48  ;;  %v345_v52 = vmax.f32 %v331_v45, 0.0 }
 0x220   :  { %v348_v51 = vmax.f32 %v342_v47, 0.0 }
 0x221   :  { %v346_v53 = vmax.f32 %v334_v49, 0.0 }
 0x222   :  { %v350_v54 = vpack.c.bf16 %v348_v51, %v347_v50 }
 0x223   :  { %v349_v55 = vpack.c.bf16 %v346_v53, %v345_v52 }
 0x225   :  { %609 = vmatprep.mubr.bf16.mxu0 %v349_v55 }
 0x226   :  { %610 = vmatmul.mubr.bf16.vlgmr.msra.gmra.mrb[4].mxu0 %v350_v54 }
 0x2f9   :  { %v611_v57 = vpop.f32.mrb[4].mxu0 }
 0x2fa   :  { %v465_v58 = vadd.f32 %v611_v57, %v514_v56  ;;  %v456_v59 = vpop.f32.mrb[5].mxu0 }
 0x2fb   :  { %v457_v60 = vadd.f32 %v514_v56, %v456_v59  ;;  %v612_v61 = vpop.f32.mrb[6].mxu0 }
 0x2fc   :  { %473 = vst [vmem:[#allocation10 + $0x10] sm:$0xff] %v465_v58  ;;  %v468_v62 = vadd.f32 %v612_v61, %v514_v56  ;;  %v459_v63 = vpop.f32.mrb[7].mxu0 }
 0x2fd   :  { %471 = vst [vmem:[#allocation10] sm:$0xff] %v457_v60  ;;  %v460_v0 = vadd.f32 %v514_v56, %v459_v63 }
 0x2fe   :  { %474 = vst [vmem:[#allocation10 + $0x18] sm:$0xff] %v468_v62 }
 0x2ff   :  { %472 = vst [vmem:[#allocation10 + $0x8] sm:$0xff] %v460_v0 }
 0x300   :  { %747 = shalt.err (!%p744_p8)
}
 0x301   :  { %s748_s9 = scalar_lea.hbm %s917_s7, 512 }
 0x302   :  { %p749_p9 = scmp.ne.s32.totalorder %s917_s7, %s748_s9  ;;  %p752_p10 = scmp.lt.u32.totalorder %s748_s9, %s917_s7 }
 0x304   :  { %p754_p11 = pnand %p752_p10, %p749_p9 }
 0x306   :  { %757 = shalt.err (!%p754_p11)
}
 0x307   :  { %s773_s16 = smov 128   ;;  %s774_s0 = smov 8  }
 0x308   :  { %486 = dma.vmem_to_hbm [thread:$0]  %s481_s29, 512, %s917_s7, [#allocation4], %s773_s16, %s773_s16, %s774_s0  }
 0x309   :  { %764 = dma.done.wait [#allocation4], 512  }
 0x30a   :  { %765 = vsyncadd [#allocation4], 4294966784 }
 0x30b   :  { %490 = vsyncpa [#allocation3], 1 }
 0x30c   :  { %491 = vsyncpa [#allocation6], 1 }
 0x30d   :  { %492 = vsyncpa [#allocation9], 1 }
 0x30e   :  { %493 = vsyncpa [#allocation4], 1 }

</bundles_post_ra>
